<compile_context>
chip_gen: v7x
topology: tpu7x:2x2x1
jax: 0.10.0
libtpu: 0.0.40
codegen_flags: <defaults>
</compile_context>

<pallas_src>
import functools

import jax
import jax.numpy as jnp
from jax.experimental import pallas as pl
from jax.experimental.pallas import tpu as pltpu

INPUT_SIZE = 784
HIDDEN = 50
NUM_CLASSES = 10

HIDDEN_PAD = 128       # lane-dense hidden width (50 -> 128)
OUT_PAD = 128          # lane-dense output width (10 -> 128)
DEFAULT_TB = 2048      # batch tile (multiple of 16)
VMEM_LIMIT = 48 << 20  # scoped VMEM; safe on v5e/v6e (128 MiB) and v7x (64 MiB/TC)


def _round_up(n, m):
    return ((n + m - 1) // m) * m


def mlp_kernel(x_ref, w1_ref, b1_ref, w2_ref, b2_ref, o_ref):
    # In-VMEM cast to bf16 (no extra HBM traffic) -> single-pass MXU matmuls.
    x = x_ref[...].astype(jnp.bfloat16)
    # fc1: bf16 x bf16 matmul with f32 accumulation, bias + ReLU in f32.
    h = jnp.dot(x, w1_ref[...], preferred_element_type=jnp.float32)
    h = jnp.maximum(h + b1_ref[...], 0.0).astype(jnp.bfloat16)     # (TB, 128)
    # fc2: bf16 x bf16 matmul with f32 accumulation, bias in f32.
    out = jnp.dot(h, w2_ref[...], preferred_element_type=jnp.float32)
    o_ref[...] = (out + b2_ref[...]).astype(o_ref.dtype)           # bf16 store


def prepare_params(w1, b1, w2, b2):
    """Pad to lane-dense shapes and cast weights to bf16.  Call ONCE, not per step."""
    w1p = jnp.zeros((INPUT_SIZE, HIDDEN_PAD), jnp.bfloat16)
    w1p = w1p.at[:, :HIDDEN].set(w1.astype(jnp.bfloat16))
    b1p = jnp.zeros((1, HIDDEN_PAD), jnp.float32).at[:, :HIDDEN].set(b1)
    w2p = jnp.zeros((HIDDEN_PAD, OUT_PAD), jnp.bfloat16)
    w2p = w2p.at[:HIDDEN, :NUM_CLASSES].set(w2.astype(jnp.bfloat16))
    b2p = jnp.zeros((1, OUT_PAD), jnp.float32).at[:, :NUM_CLASSES].set(b2)
    return w1p, b1p, w2p, b2p


@functools.partial(jax.jit, static_argnames=("tb",))
def nn_forward(x, w1p, b1p, w2p, b2p, *, tb=DEFAULT_TB):
    """x: (B, 784) f32 or bf16; padded params from prepare_params().

    Returns (B, 10) f32 == relu(x @ w1 + b1) @ w2 + b2 (bf16 matmul / f32 accum).
    """
    B = x.shape[0]

    # Batch tile: multiple of 16 (bf16 sublane packing) and small enough that
    # the grid has >= 2 steps whenever B > 16 (keeps both v7x TCs busy).
    half = -(-B // 2)
    tb_eff = min(tb, max(16, _round_up(half, 16)))
    grid = (pl.cdiv(B, tb_eff),)   # ragged last block; no HBM-copying jnp.pad

    cost = pl.CostEstimate(
        flops=2 * B * (INPUT_SIZE * HIDDEN_PAD + HIDDEN_PAD * OUT_PAD),
        transcendentals=0,
        bytes_accessed=(B * INPUT_SIZE * x.dtype.itemsize   # x in
                        + INPUT_SIZE * HIDDEN_PAD * 2       # w1 (bf16)
                        + HIDDEN_PAD * OUT_PAD * 2          # w2 (bf16)
                        + B * OUT_PAD * 2),                 # out (bf16)
    )

    out = pl.pallas_call(
        mlp_kernel,
        out_shape=jax.ShapeDtypeStruct((B, OUT_PAD), jnp.bfloat16),
        grid=grid,
        in_specs=[
            pl.BlockSpec((tb_eff, INPUT_SIZE), lambda i: (i, 0)),      # x tile (pipelined)
            pl.BlockSpec((INPUT_SIZE, HIDDEN_PAD), lambda i: (0, 0)),  # w1 resident
            pl.BlockSpec((1, HIDDEN_PAD), lambda i: (0, 0)),           # b1 resident
            pl.BlockSpec((HIDDEN_PAD, OUT_PAD), lambda i: (0, 0)),     # w2 resident
            pl.BlockSpec((1, OUT_PAD), lambda i: (0, 0)),              # b2 resident
        ],
        out_specs=pl.BlockSpec((tb_eff, OUT_PAD), lambda i: (i, 0)),
        compiler_params=pltpu.CompilerParams(
            dimension_semantics=("parallel",),
            vmem_limit_bytes=VMEM_LIMIT,
        ),
        cost_estimate=cost,
    )(x, w1p, b1p, w2p, b2p)

    # Drop lane padding; return f32 logits like the PyTorch module.
    return out[:, :NUM_CLASSES].astype(jnp.float32)


def init_params(key):
    """Deterministic init mimicking nn.Linear default (uniform +/- 1/sqrt(fan_in))."""
    k1, k2, k3, k4 = jax.random.split(key, 4)
    bound1 = 1.0 / jnp.sqrt(INPUT_SIZE)
    bound2 = 1.0 / jnp.sqrt(HIDDEN)
    # Stored as (in, out) so the kernel does x @ W (equivalent to x @ W_pt.T).
    w1 = jax.random.uniform(k1, (INPUT_SIZE, HIDDEN), jnp.float32, -bound1, bound1)
    b1 = jax.random.uniform(k2, (1, HIDDEN), jnp.float32, -bound1, bound1)
    w2 = jax.random.uniform(k3, (HIDDEN, NUM_CLASSES), jnp.float32, -bound2, bound2)
    b2 = jax.random.uniform(k4, (1, NUM_CLASSES), jnp.float32, -bound2, bound2)
    return w1, b1, w2, b2


if __name__ == "__main__":
    key = jax.random.PRNGKey(0)
    kx, kp = jax.random.split(key)

    batch = 32
    x = jax.random.normal(kx, (batch, INPUT_SIZE), jnp.float32)
    w1, b1, w2, b2 = init_params(kp)
    params = prepare_params(w1, b1, w2, b2)   # pad/cast once, outside per-call path

    out = nn_forward(x, *params)
    out = jax.block_until_ready(out)
    assert out.shape == (batch, NUM_CLASSES)

    # Matched reference: same bf16 operands / f32 accumulation / bf16 store.
    xb = x.astype(jnp.bfloat16)
    h_ref = jnp.maximum(
        jnp.dot(xb, w1.astype(jnp.bfloat16), preferred_element_type=jnp.float32) + b1,
        0.0)
    ref = jnp.dot(h_ref.astype(jnp.bfloat16), w2.astype(jnp.bfloat16),
                  preferred_element_type=jnp.float32) + b2
    ref = ref.astype(jnp.bfloat16).astype(jnp.float32)
    assert jnp.allclose(out, ref, atol=2e-2, rtol=2e-2)

    # Sanity check against the full-f32 math of the original module
    # (looser tolerance: bf16 matmul path is an intentional precision choice).
    ref_f32 = jnp.maximum(x @ w1 + b1, 0.0) @ w2 + b2
    assert jnp.allclose(out, ref_f32, atol=5e-2, rtol=5e-2)

    print("KERNEL_OK")
</pallas_src>

<mosaic_0001>
module attributes {stable_mosaic.version = 11 : i64} {
  func.func @mlp_kernel(%arg0: i32, %arg1: memref<16x784xf32, #tpu.memory_space<vmem>>, %arg2: memref<784x128xbf16, #tpu.memory_space<vmem>>, %arg3: memref<1x128xf32, #tpu.memory_space<vmem>>, %arg4: memref<128x128xbf16, #tpu.memory_space<vmem>>, %arg5: memref<1x128xf32, #tpu.memory_space<vmem>>, %arg6: memref<16x128xbf16, #tpu.memory_space<vmem>>) attributes {dimension_semantics = [#tpu.dimension_semantics<parallel>], iteration_bounds = array<i64: 2>, scalar_prefetch = 0 : i64, scratch_operands = 0 : i64, tpu.core_type = #tpu.core_type<tc>, window_params = [{transform_indices = @transform_0, window_bounds = array<i64: 16, 784>}, {pipeline_mode = #tpu.pipeline_mode<synchronous>, transform_indices = @transform_1, window_bounds = array<i64: 784, 128>}, {pipeline_mode = #tpu.pipeline_mode<synchronous>, transform_indices = @transform_2, window_bounds = array<i64: 1, 128>}, {pipeline_mode = #tpu.pipeline_mode<synchronous>, transform_indices = @transform_3, window_bounds = array<i64: 128, 128>}, {pipeline_mode = #tpu.pipeline_mode<synchronous>, transform_indices = @transform_4, window_bounds = array<i64: 1, 128>}, {transform_indices = @transform_5, window_bounds = array<i64: 16, 128>}]} {
    %c0 = arith.constant 0 : index
    %c0_0 = arith.constant 0 : index
    %0 = vector.load %arg1[%c0, %c0_0] : memref<16x784xf32, #tpu.memory_space<vmem>>, vector<16x784xf32>
    %1 = arith.truncf %0 : vector<16x784xf32> to vector<16x784xbf16>
    %c0_1 = arith.constant 0 : index
    %c0_2 = arith.constant 0 : index
    %2 = vector.load %arg2[%c0_1, %c0_2] : memref<784x128xbf16, #tpu.memory_space<vmem>>, vector<784x128xbf16>
    %cst = arith.constant dense<0.000000e+00> : vector<16x128xf32>
    %3 = tpu.matmul %1, %2, %cst {dimension_numbers = #tpu.dot_dimension_numbers<[1], [0], [0], [1], [0, 0, 1, 1], [], []>} : vector<16x784xbf16>, vector<784x128xbf16>, vector<16x128xf32> -> vector<16x128xf32>
    %c0_3 = arith.constant 0 : index
    %c0_4 = arith.constant 0 : index
    %4 = vector.load %arg3[%c0_3, %c0_4] : memref<1x128xf32, #tpu.memory_space<vmem>>, vector<1x128xf32>
    %5 = vector.broadcast %4 : vector<1x128xf32> to vector<16x128xf32>
    %6 = arith.addf %3, %5 : vector<16x128xf32>
    %cst_5 = arith.constant 0.000000e+00 : f32
    %7 = vector.broadcast %cst_5 : f32 to vector<16x128xf32>
    %8 = arith.maximumf %6, %7 : vector<16x128xf32>
    %9 = arith.truncf %8 : vector<16x128xf32> to vector<16x128xbf16>
    %c0_6 = arith.constant 0 : index
    %c0_7 = arith.constant 0 : index
    %10 = vector.load %arg4[%c0_6, %c0_7] : memref<128x128xbf16, #tpu.memory_space<vmem>>, vector<128x128xbf16>
    %cst_8 = arith.constant dense<0.000000e+00> : vector<16x128xf32>
    %11 = tpu.matmul %9, %10, %cst_8 {dimension_numbers = #tpu.dot_dimension_numbers<[1], [0], [0], [1], [0, 0, 1, 1], [], []>} : vector<16x128xbf16>, vector<128x128xbf16>, vector<16x128xf32> -> vector<16x128xf32>
    %c0_9 = arith.constant 0 : index
    %c0_10 = arith.constant 0 : index
    %12 = vector.load %arg5[%c0_9, %c0_10] : memref<1x128xf32, #tpu.memory_space<vmem>>, vector<1x128xf32>
    %13 = vector.broadcast %12 : vector<1x128xf32> to vector<16x128xf32>
    %14 = arith.addf %11, %13 : vector<16x128xf32>
    %15 = arith.truncf %14 : vector<16x128xf32> to vector<16x128xbf16>
    %c0_11 = arith.constant 0 : index
    %c0_12 = arith.constant 0 : index
    %16 = vector.load %arg6[%c0_11, %c0_12] : memref<16x128xbf16, #tpu.memory_space<vmem>>, vector<16x128xbf16>
    tpu.vector_store %arg6[%c0_11, %c0_12], %15 {strides = array<i32>} : memref<16x128xbf16, #tpu.memory_space<vmem>>, vector<16x128xbf16>,
    return
  }
  func.func @transform_0(%arg0: i32) -> (i32, i32) {
    %c0_i32 = arith.constant 0 : i32
    %c0_i32_0 = arith.constant 0 : i32
    return %arg0, %c0_i32 : i32, i32
  }
  func.func @transform_1(%arg0: i32) -> (i32, i32) {
    %c0_i32 = arith.constant 0 : i32
    %c0_i32_0 = arith.constant 0 : i32
    %c0_i32_1 = arith.constant 0 : i32
    return %c0_i32, %c0_i32_0 : i32, i32
  }
  func.func @transform_2(%arg0: i32) -> (i32, i32) {
    %c0_i32 = arith.constant 0 : i32
    %c0_i32_0 = arith.constant 0 : i32
    %c0_i32_1 = arith.constant 0 : i32
    return %c0_i32, %c0_i32_0 : i32, i32
  }
  func.func @transform_3(%arg0: i32) -> (i32, i32) {
    %c0_i32 = arith.constant 0 : i32
    %c0_i32_0 = arith.constant 0 : i32
    %c0_i32_1 = arith.constant 0 : i32
    return %c0_i32, %c0_i32_0 : i32, i32
  }
  func.func @transform_4(%arg0: i32) -> (i32, i32) {
    %c0_i32 = arith.constant 0 : i32
    %c0_i32_0 = arith.constant 0 : i32
    %c0_i32_1 = arith.constant 0 : i32
    return %c0_i32, %c0_i32_0 : i32, i32
  }
  func.func @transform_5(%arg0: i32) -> (i32, i32) {
    %c0_i32 = arith.constant 0 : i32
    %c0_i32_0 = arith.constant 0 : i32
    return %arg0, %c0_i32 : i32, i32
  }
}

</mosaic_0001>

<bundles_post_ra>
// kernel: nn_forward.1
= control target key start
LH: loop header
LB: loop body
LE: loop exit
PB: predicated region body
PF: predicated region fallthrough
CT: control target
= control target key end

     0   :  { %10 = vsyncpa [#allocation3], 0  ;;  %s1769_s0 = inlined_call_operand.hbm [shape: f32[32,784], index: 0, kind: input, shape index: {}]   ;;  %s1770_s1 = inlined_call_operand.hbm [shape: bf16[784,128], index: 1, kind: input, shape index: {}]   ;;  %s1771_s2 = inlined_call_operand.vmem [shape: f32[1,128], index: 2, kind: input, shape index: {}]   ;;  %s1772_s3 = inlined_call_operand.hbm [shape: bf16[128,128], index: 3, kind: input, shape index: {}]   ;;  %s1773_s4 = inlined_call_operand.vmem [shape: f32[1,128], index: 4, kind: input, shape index: {}]   ;;  %s1774_s5 = inlined_call_operand.vmem [shape: bf16[32,128], index: 5, kind: output, shape index: {}]  }
   0x1   :  { %12 = vsyncpa [#allocation3 + $0x1], 0 }
   0x2   :  { %13 = vsyncpa [#allocation5], 0  ;;  %s1556_s18 = smov 0   ;;  %s1558_s19 = smov 0  }
   0x3   :  { %s1560_s20 = smov 0   ;;  %s1562_s21 = smov 0  }
   0x4 LB: > { %s1077_s22 = sadd.s32 4294967295, %s1515_s21   ;;  %p39_p0 = scmp.ne.s32.totalorder %s1507_s19, %s1503_s18  ;;  %s1515_s21 = sphi %s1562_s21, %s1790_s21   ;;  %s1511_s20 = sphi %s1560_s20, %s1789_s20   ;;  %s1507_s19 = sphi %s1558_s19, %s1788_s19   ;;  %s1503_s18 = sphi %s1556_s18, %s1787_s18  }
   0x5   : > { %p1578_p1 = scmp.eq.s32.totalorder %s1077_s22, 0  ;;  %p1079_p2 = scmp.ge.s32.totalorder %s1515_s21, 1 }
   0x6   : > { %p160_p3 = scmp.lt.s32.totalorder %s1515_s21, 3  ;;  %s1517_s26 = smov [#allocation4]  }
   0x7   : > { %s1779_s23 = scalar_select %p1578_p1, 1, 0 }
   0x8   : > { %p1586_p4 = por %p1578_p1, %p39_p0  ;;  %p1590_p5 = pnand %p1079_p2, %p160_p3 }
   0x9   : > { %s172_s27 = sshll.u32 %s1517_s26, 4  ;;  %s1518_s29 = smov [#allocation6]   ;;  %s173_s27 = int_to_ptr.vmem [resolvable:$true] %s172_s27 }
   0xa   : > { %s1780_s24 = scalar_select %p1586_p4, 1, 0 }
   0xb   : > { %s1781_s25 = scalar_select %p1590_p5, 1, 0 }
   0xc   : > { %p1278_p6 = pneg %p1590_p5  ;;  %s188_s30 = sshll.u32 %s1518_s29, 4  ;;  %s1602_s30 = int_to_ptr.vmem [resolvable:$true] %s188_s30 }
   0xd   : > { %s1391_s8 = scalar_lea.hbm %s1770_s1, 6272 }
   0xe   : > { %p1598_p7 = pnand %p1278_p6, %p1578_p1  ;;  %p1392_p8 = scmp.ne.s32.totalorder %s1770_s1, %s1391_s8 }
   0xf   : > { %p1398_p12 = scmp.lt.u32.totalorder %s1391_s8, %s1770_s1 }
  0x10   : > { %p1393_p9 = pneg %p1598_p7 }
  0x12   : > { %p1394_p10 = pnand %p1393_p9, %p1392_p8 }
  0x14   : > { %p1395_p11 = pneg %p1394_p10 }
  0x16   : > { %p1400_p13 = pnand %p1398_p12, %p1395_p11 }
  0x18   : > { %1403 = shalt.err (!%p1400_p13)
}
  0x19   : > { %s1404_s13 = scalar_lea.vmem %s173_s27, 6272  ;;  %p1412_p6 = scmp.lt.s32.totalorder %s173_s27, %s173_s27 }
  0x1a   : > { %p1405_p0 = scmp.ne.s32.totalorder %s173_s27, %s1404_s13  ;;  %p1413_p1 = scmp.lt.s32.totalorder %s1404_s13, %s1404_s13 }
  0x1c   : > { %p1407_p2 = pnand %p1405_p0, %p1393_p9  ;;  %p1414_p4 = por %p1413_p1, %p1412_p6 }
  0x1e   : > { %p1408_p3 = pneg %p1407_p2 }
  0x20   : > { %p1415_p5 = pnand %p1414_p4, %p1408_p3 }
  0x22   : > { %1418 = shalt.err (!%p1415_p5)
}
  0x23   : > { %s1519_s14 = smov 64   ;;  %s1520_s15 = smov 4  }
  0x24   : > { %1281 = dma.hbm_to_vmem [thread:$0]  (!%p1598_p7), %s1770_s1, 6272, %s173_s27, [#allocation5], %s1519_s14, %s1519_s14, %s1520_s15  }
  0x25   : > { %s1419_s29 = scalar_lea.hbm %s1772_s3, 1024 }
  0x26   : > { %p1420_p8 = scmp.ne.s32.totalorder %s1772_s3, %s1419_s29  ;;  %p1426_p5 = scmp.lt.u32.totalorder %s1419_s29, %s1772_s3 }
  0x28   : > { %p1422_p1 = pnand %p1420_p8, %p1393_p9 }
  0x2a   : > { %p1423_p4 = pneg %p1422_p1 }
  0x2c   : > { %p1428_p10 = pnand %p1426_p5, %p1423_p4 }
  0x2e   : > { %1431 = shalt.err (!%p1428_p10)
}
  0x2f   : > { %s1432_s27 = scalar_lea.vmem %s1602_s30, 1024  ;;  %p1440_p0 = scmp.lt.s32.totalorder %s1602_s30, %s1602_s30 }
  0x30   : > { %p1433_p11 = scmp.ne.s32.totalorder %s1602_s30, %s1432_s27  ;;  %p1441_p2 = scmp.lt.s32.totalorder %s1432_s27, %s1432_s27 }
  0x32   : > { %p1435_p12 = pnand %p1433_p11, %p1393_p9  ;;  %p1442_p3 = por %p1441_p2, %p1440_p0 }
  0x34   : > { %p1436_p13 = pneg %p1435_p12 }
  0x36   : > { %p1443_p6 = pnand %p1442_p3, %p1436_p13 }
  0x38   : > { %1446 = shalt.err (!%p1443_p6)
}
  0x39   : > { %1284 = dma.hbm_to_vmem [thread:$0]  (!%p1598_p7), %s1772_s3, 1024, %s1602_s30, [#allocation5], %s1519_s14, %s1519_s14, %s1520_s15  }
  0x3a   : > { %s1652_s12 = sadd.s32 1, %s1515_s21   ;;  %s26_s13 = sadd.s32 1, %s1511_s20 }
  0x3b   : > { %s23_s28 = ssub.s32 %s1515_s21, %s1652_s12  ;;  %p33_p9 = scmp.ne.s32.totalorder %s1511_s20, %s1507_s19 }
  0x3c   : > { %p24_p8 = scmp.eq.s32.totalorder %s23_s28, 0  ;;  %p34_p1 = scmp.eq.s32.totalorder %s1515_s21, 0 }
  0x3d   : > { %p1291_p4 = scmp.lt.s32.totalorder %s1515_s21, 2  ;;  %s205_s16 = sand.u32 1, %s1511_s20  }
  0x3e   : > { %s1663_s17 = scalar_select %p24_p8, %s1511_s20, %s26_s13  }
  0x3f   : > { %p35_p5 = por %p34_p1, %p33_p9  ;;  %s1265_s18 = smul.u32 112, %s205_s16 }
  0x40   : > { %s1266_s26 = smul.u32 1792, %s1515_s21  ;;  %s1677_s8 = scalar_lea.sflag [#allocation3], %s205_s16 }
  0x41   : > { %p1666_p10 = pnand %p1291_p4, %p35_p5  ;;  %s209_s6 = scalar_lea.vmem [#allocation2], %s1265_s18 }
  0x42   : > { %s1673_s15 = scalar_lea.hbm %s1769_s0, %s1266_s26  ;;  %s217_s7 = sshll.u32 %s209_s6, 4  ;;  %s1675_s7 = int_to_ptr.vmem [resolvable:$true] %s217_s7 }
  0x43   : > { %s1447_s9 = scalar_lea.hbm %s1673_s15, 1792  ;;  %p1449_p11 = pneg %p1666_p10 }
  0x44   : > { %p1448_p7 = scmp.ne.s32.totalorder %s1673_s15, %s1447_s9  ;;  %s1452_s11 = scalar_lea.hbm %s1769_s0, 3584 }
  0x45   : > { %p1453_p0 = scmp.lt.u32.totalorder %s1673_s15, %s1769_s0  ;;  %p1454_p2 = scmp.lt.u32.totalorder %s1452_s11, %s1447_s9 }
  0x46   : > { %p1450_p12 = pnand %p1449_p11, %p1448_p7  ;;  %p1456_p6 = scmp.lt.u32.totalorder %s1447_s9, %s1673_s15 }
  0x47   : > { %p1455_p3 = por %p1454_p2, %p1453_p0 }
  0x48   : > { %p1451_p13 = pneg %p1450_p12 }
  0x49   : > { %p1457_p9 = por %p1456_p6, %p1455_p3 }
  0x4b   : > { %p1458_p8 = pnand %p1457_p9, %p1451_p13 }
  0x4d   : > { %1461 = shalt.err (!%p1458_p8)
}
  0x4e   : > { %s1462_s16 = scalar_lea.vmem %s1675_s7, 1792  ;;  %s1521_s18 = smov [#allocation2]  }
  0x4f   : > { %p1463_p1 = scmp.ne.s32.totalorder %s1675_s7, %s1462_s16  ;;  %s1467_s26 = sshll.u32 %s1521_s18, 4  ;;  %s1468_s26 = int_to_ptr.vmem [resolvable:$false] %s1467_s26 }
  0x50   : > { %s1469_s30 = scalar_lea.vmem %s1468_s26, 3584  ;;  %p1470_p7 = scmp.lt.s32.totalorder %s1675_s7, %s1468_s26 }
  0x51   : > { %p1465_p4 = pnand %p1463_p1, %p1449_p11  ;;  %p1471_p12 = scmp.lt.s32.totalorder %s1469_s30, %s1462_s16 }
  0x53   : > { %p1466_p5 = pneg %p1465_p4  ;;  %p1472_p0 = por %p1471_p12, %p1470_p7 }
  0x55   : > { %p1473_p2 = pnand %p1472_p0, %p1466_p5 }
  0x57   : > { %1476 = shalt.err (!%p1473_p2)
}
  0x58   : > { %s1522_s14 = smov 896   ;;  %s1523_s6 = smov 56  }
  0x59   : > { %1288 = dma.hbm_to_vmem [thread:$0]  (!%p1666_p10), %s1673_s15, 1792, %s1675_s7, %s1677_s8, %s1522_s14, %s1522_s14, %s1523_s6  }
  0x5a   : > { %p1784_p11 = scmp.ne.s32.totalorder %s1781_s25, 0 }
  0x5b   : > { %s231_s9 = sand.u32 (!%p1784_p11), 1, %s1507_s19   ;;  %p1785_p13 = scmp.ne.s32.totalorder (!%p1784_p11), %s1780_s24, 0 }
  0x5c   : > { %229 = sbr.rel (%p1784_p11) target bundleno = 612 (0x264), region = 40  ;;  %s232_s10 = scalar_lea.sflag (!%p1784_p11), [#allocation3], %s231_s9 }
  0x5d   : > { %s1267_s27 = smul.u32 (!%p1784_p11), 112, %s231_s9 }
  0x5f   : > { %s1708_s11 = scalar_lea.vmem (!%p1784_p11), [#allocation2], %s1267_s27 }
  0x63   : > { %1494 = dma.done.wait (%p1785_p13), %s232_s10, 1792  }
  0x64   : > { %1496 = vsyncadd (%p1785_p13), %s232_s10, 4294965504  ;;  %p1786_p3 = scmp.ne.s32.totalorder %s1779_s23, 0 }
  0x66   : > { %1498 = dma.done.wait (%p1786_p3), [#allocation5], 7296  }
  0x67   : > { %1500 = vsyncadd (%p1786_p3), [#allocation5], 4294960000  ;;  %v1334_v0 = vld [vmem:[#allocation4 + $0x40] sm:$0xff]   ;;  %v1338_v4 = vld [vmem:[#allocation4 + $0x48] sm:$0xff]   ;;  %v1524_v43 = vmov 0.0   ;;  %vm1525_vm0 = vmmov 0  }
  0x68   : > { %v1335_v1 = vld [vmem:[#allocation4] sm:$0xff]   ;;  %1162 = vmatprep.subr.bf16.mxu0 %v1334_v0  ;;  %v1339_v5 = vld [vmem:[#allocation4 + $0x8] sm:$0xff]   ;;  %v1342_v8 = vld [vmem:[#allocation4 + $0x50] sm:$0xff]   ;;  %vm698_vm1 = vcmask 130048   ;;  %s1089_s25 = sshll.u32 %s1077_s22, 1 }
  0x69   : > { %v1336_v2 = vld [vmem:[#allocation4 + $0xc0] sm:$0xff]   ;;  %1163 = vmatpush3.bf16.msra.mxu0 %v1335_v1  ;;  %v1340_v6 = vld [vmem:[#allocation4 + $0xc8] sm:$0xff]   ;;  %v1343_v9 = vld [vmem:[#allocation4 + $0x10] sm:$0xff]   ;;  %p272_p10 = scmp.lt.s32.totalorder %s1089_s25, 3 }
  0x6a   : > { %v1337_v3 = vld [vmem:[#allocation4 + $0x80] sm:$0xff]   ;;  %1184 = vmatprep.subr.bf16.mxu1 %v1336_v2  ;;  %1164 = vmatprep.subr.bf16.mxu0 %v1338_v4  ;;  %v1341_v7 = vld [vmem:[#allocation4 + $0x88] sm:$0xff]   ;;  %v1344_v10 = vld [vmem:[#allocation4 + $0xd0] sm:$0xff]  }
  0x6b   : > { %1185 = vmatpush3.bf16.msra.mxu1 %v1337_v3  ;;  %v1345_v11 = vld [vmem:[#allocation4 + $0x90] sm:$0xff]   ;;  %v1346_v12 = vld [vmem:[#allocation4 + $0x58] sm:$0xff]   ;;  %v1350_v16 = vld [vmem:[#allocation4 + $0x60] sm:$0xff]   ;;  %s1792_s25 = smov (!%p272_p10, %s1089_s25), 3 }
  0x6c   : > { %1186 = vmatprep.subr.bf16.mxu1 %v1340_v6  ;;  %v1347_v13 = vld [vmem:[#allocation4 + $0x18] sm:$0xff]   ;;  %v1351_v17 = vld [vmem:[#allocation4 + $0x20] sm:$0xff]   ;;  %v1354_v20 = vld [vmem:[#allocation4 + $0x68] sm:$0xff]   ;;  %s1090_s7 = sshll.u32 %s1792_s25, 2 }
  0x6d   : > { %1165 = vmatpush3.bf16.msra.mxu0 %v1339_v5  ;;  %v1348_v14 = vld [vmem:[#allocation4 + $0xd8] sm:$0xff]   ;;  %v1352_v18 = vld [vmem:[#allocation4 + $0xe0] sm:$0xff]   ;;  %v1355_v21 = vld [vmem:[#allocation4 + $0x28] sm:$0xff]   ;;  %s275_s28 = scalar_lea.vmem %s1774_s5, %s1090_s7 }
  0x6e   : > { %1166 = vmatprep.subr.bf16.mxu0 %v1342_v8  ;;  %v1349_v15 = vld [vmem:[#allocation4 + $0x98] sm:$0xff]   ;;  %v1353_v19 = vld [vmem:[#allocation4 + $0xa0] sm:$0xff]   ;;  %v1356_v22 = vld [vmem:[#allocation4 + $0xe8] sm:$0xff]  }
  0x6f   : > { %1187 = vmatpush3.bf16.msra.mxu1 %v1341_v7  ;;  %v1357_v23 = vld [vmem:[#allocation4 + $0xa8] sm:$0xff]   ;;  %v1358_v24 = vld [vmem:[#allocation4 + $0x70] sm:$0xff]   ;;  %v1362_v28 = vld [vmem:[#allocation4 + $0x78] sm:$0xff]  }
  0x70   : > { %1188 = vmatprep.subr.bf16.mxu1 %v1344_v10  ;;  %v1359_v25 = vld [vmem:[#allocation4 + $0x30] sm:$0xff]   ;;  %v1363_v29 = vld [vmem:[#allocation4 + $0x38] sm:$0xff]   ;;  %v1366_v38 = vld [vmem:[#allocation4 + $0x140] sm:$0xff]  }
  0x71   : > { %1167 = vmatpush3.bf16.msra.mxu0 %v1343_v9  ;;  %v1360_v26 = vld [vmem:[#allocation4 + $0xf0] sm:$0xff]   ;;  %v1364_v30 = vld [vmem:[#allocation4 + $0xf8] sm:$0xff]   ;;  %v1367_v42 = vld [vmem:[#allocation4 + $0x100] sm:$0xff]  }
  0x72   : > { %1168 = vmatprep.subr.bf16.mxu0 %v1346_v12  ;;  %v1361_v27 = vld [vmem:[#allocation4 + $0xb0] sm:$0xff]   ;;  %v279_v31 = vld [vmem:[%s1708_s11 + $0x8] sm:$0xff]  ;;  %v285_v36 = vld [vmem:[%s1708_s11 + $0x38] sm:$0xff] }
  0x73   : > { %1189 = vmatpush3.bf16.msra.mxu1 %v1345_v11  ;;  %v286_v32 = vld [vmem:[%s1708_s11 + $0x40] sm:$0xff]  ;;  %v1365_v34 = vld [vmem:[#allocation4 + $0xb8] sm:$0xff]   ;;  %v288_v40 = vld [vmem:[%s1708_s11 + $0x50] sm:$0xff] }
  0x74   : > { %1190 = vmatprep.subr.bf16.mxu1 %v1348_v14  ;;  %v293_v33 = vpack.c.bf16 %v286_v32, %v279_v31  ;;  %v278_v35 = vld [vmem:[%s1708_s11] sm:$0xff]  ;;  %v281_v39 = vld [vmem:[%s1708_s11 + $0x18] sm:$0xff]  ;;  %v280_v44 = vld [vmem:[%s1708_s11 + $0x10] sm:$0xff] }
  0x75   : > { %1169 = vmatpush3.bf16.msra.mxu0 %v1347_v13  ;;  %v292_v37 = vpack.c.bf16 %v285_v36, %v278_v35  ;;  %v295_v41 = vpack.c.bf16 %v288_v40, %v281_v39  ;;  %v287_v45 = vld [vmem:[%s1708_s11 + $0x48] sm:$0xff]  ;;  %v1370_v49 = vld [vmem:[#allocation4 + $0x150] sm:$0xff]   ;;  %v1374_v53 = vld [vmem:[#allocation4 + $0x160] sm:$0xff]  }
  0x76   : > { %1170 = vmatprep.subr.bf16.mxu0 %v1350_v16  ;;  %734 = vmatprep.mubr.bf16.mxu0 %v293_v33  ;;  %v294_v46 = vpack.c.bf16 %v287_v45, %v280_v44  ;;  %v1368_v47 = vld [vmem:[#allocation4 + $0x148] sm:$0xff]   ;;  %v1371_v50 = vld [vmem:[#allocation4 + $0x110] sm:$0xff]   ;;  %v1372_v51 = vld [vmem:[#allocation4 + $0x158] sm:$0xff]  }
  0x77   : > { %1191 = vmatpush3.bf16.msra.mxu1 %v1349_v15  ;;  %775 = vmatprep.mubr.bf16.mxu1 %v295_v41  ;;  %v1369_v48 = vld [vmem:[#allocation4 + $0x108] sm:$0xff]   ;;  %v1373_v52 = vld [vmem:[#allocation4 + $0x118] sm:$0xff]   ;;  %v1375_v54 = vld [vmem:[#allocation4 + $0x120] sm:$0xff]  }
  0x78   : > { %1192 = vmatprep.subr.bf16.mxu1 %v1352_v18  ;;  %v1376_v55 = vld [vmem:[#allocation4 + $0x168] sm:$0xff]   ;;  %v1382_v56 = vld [vmem:[#allocation4 + $0x180] sm:$0xff]   ;;  %v1378_v59 = vld [vmem:[#allocation4 + $0x170] sm:$0xff]  }
  0x79   : > { %1171 = vmatpush3.bf16.msra.mxu0 %v1351_v17  ;;  %v283_v57 = vld [vmem:[%s1708_s11 + $0x28] sm:$0xff]  ;;  %v290_v60 = vld [vmem:[%s1708_s11 + $0x60] sm:$0xff]  ;;  %v284_v62 = vld [vmem:[%s1708_s11 + $0x30] sm:$0xff] }
  0x7a   : > { %1172 = vmatprep.subr.bf16.mxu0 %v1354_v20  ;;  %v1377_v58 = vld [vmem:[#allocation4 + $0x128] sm:$0xff]   ;;  %v297_v61 = vpack.c.bf16 %v290_v60, %v283_v57  ;;  %v1379_v1 = vld [vmem:[#allocation4 + $0x130] sm:$0xff]   ;;  %v1380_v2 = vld [vmem:[#allocation4 + $0x178] sm:$0xff]  }
  0x7b   : > { %1193 = vmatpush3.bf16.msra.mxu1 %v1353_v19  ;;  %v291_v63 = vld [vmem:[%s1708_s11 + $0x68] sm:$0xff]  ;;  %v282_v4 = vld [vmem:[%s1708_s11 + $0x20] sm:$0xff]  ;;  %v289_v5 = vld [vmem:[%s1708_s11 + $0x58] sm:$0xff] }
  0x7c   : > { %1194 = vmatprep.subr.bf16.mxu1 %v1356_v22  ;;  %v298_v0 = vpack.c.bf16 %v291_v63, %v284_v62  ;;  %v1381_v3 = vld [vmem:[#allocation4 + $0x138] sm:$0xff]   ;;  %v296_v6 = vpack.c.bf16 %v289_v5, %v282_v4  ;;  %v1383_v7 = vld [vmem:[#allocation6] sm:$0xff]   ;;  %v1384_v8 = vld [vmem:[#allocation6 + $0x8] sm:$0xff]  }
  0x7d   : > { %1173 = vmatpush3.bf16.msra.mxu0 %v1355_v21  ;;  %v1385_v9 = vld [vmem:[#allocation6 + $0x10] sm:$0xff]   ;;  %v1386_v10 = vld [vmem:[#allocation6 + $0x18] sm:$0xff]   ;;  %v1387_v11 = vld [vmem:[#allocation6 + $0x20] sm:$0xff]  }
  0x7e   : > { %1174 = vmatprep.subr.bf16.mxu0 %v1358_v24  ;;  %v1388_v12 = vld [vmem:[#allocation6 + $0x28] sm:$0xff]   ;;  %v1389_v13 = vld [vmem:[#allocation6 + $0x30] sm:$0xff]   ;;  %v1390_v14 = vld [vmem:[#allocation6 + $0x38] sm:$0xff]  }
  0x7f   : > { %1195 = vmatpush3.bf16.msra.mxu1 %v1357_v23  ;;  %v1091_v16 = vld [vmem:[%s1771_s2] ss:$0 sm:$0xff] }
  0x80   : > { %1196 = vmatprep.subr.bf16.mxu1 %v1360_v26 }
  0x81   : > { %1175 = vmatpush3.bf16.msra.mxu0 %v1359_v25 }
  0x82   : > { %1176 = vmatprep.subr.bf16.mxu0 %v1362_v28 }
  0x83   : > { %1197 = vmatpush3.bf16.msra.mxu1 %v1361_v27 }
  0x84   : > { %1198 = vmatprep.subr.bf16.mxu1 %v1364_v30 }
  0x85   : > { %1177 = vmatpush3.bf16.msra.mxu0 %v1363_v29 }
  0x86   : > { %1206 = vmatprep.subr.bf16.mxu0 %v1366_v38 }
  0x87   : > { %1199 = vmatpush3.bf16.msra.mxu1 %v1365_v34 }
  0x88   : > { %1239 = vmatprep.subr.bf16.mxu1 %v1524_v43  ;;  %735 = vmatmul.mubr.bf16.vlgmr.msra.gmra.mrb[0].mxu0 %v292_v37 }
  0x89   : > { %1207 = vmatpush3.bf16.msra.mxu0 %v1367_v42  ;;  %816 = vmatprep.mubr.bf16.mxu0 %v297_v61 }
  0x8a   : > { %776 = vmatmul.mubr.bf16.vlgmr.msra.gmra.mrb[0].mxu1 %v294_v46  ;;  %1208 = vmatprep.subr.bf16.mxu0 %v1368_v47 }
  0x8b   : > { %1241 = vmatprep.mubr.msk.bf16.mxu1 %vm1525_vm0, %v1524_v43  ;;  %1240 = vmatpush3.bf16.msra.mxu1 %v1382_v56 }
  0x8c   : > { %1245 = vmatprep.subr.bf16.mxu1 %v1524_v43 }
  0x8d   : > { %1209 = vmatpush3.bf16.msra.mxu0 %v1369_v48 }
  0x8e   : > { %1210 = vmatprep.subr.bf16.mxu0 %v1370_v49  ;;  %v1142_v49 = vld [vmem:[%s1773_s4] ss:$0 sm:$0xff] }
  0x91   : > { %1211 = vmatpush3.bf16.msra.mxu0 %v1371_v50 }
  0x92   : > { %1212 = vmatprep.subr.bf16.mxu0 %v1372_v51  ;;  %1242 = vmatmul.mubr.msk.bf16.vlgmr.msra.gmra.mrb[4].mxu1 %vm698_vm1, %v298_v0 }
  0x93   : > { %1261 = vmatprep.mubr.msk.bf16.mxu1 %vm1525_vm0, %v1524_v43  ;;  %1246 = vmatpush3.bf16.msra.mxu1 %v1383_v7 }
  0x94   : > { %1247 = vmatprep.subr.bf16.mxu1 %v1524_v43 }
  0x95   : > { %1213 = vmatpush3.bf16.msra.mxu0 %v1373_v52 }
  0x96   : > { %1214 = vmatprep.subr.bf16.mxu0 %v1374_v53 }
  0x97   : > { %1248 = vmatpush3.bf16.msra.mxu1 %v1384_v8 }
  0x98   : > { %1249 = vmatprep.subr.bf16.mxu1 %v1524_v43 }
  0x99   : > { %1215 = vmatpush3.bf16.msra.mxu0 %v1375_v54 }
  0x9a   : > { %1216 = vmatprep.subr.bf16.mxu0 %v1376_v55 }
  0x9b   : > { %1250 = vmatpush3.bf16.msra.mxu1 %v1385_v9 }
  0x9c   : > { %1251 = vmatprep.subr.bf16.mxu1 %v1524_v43 }
  0x9d   : > { %1217 = vmatpush3.bf16.msra.mxu0 %v1377_v58 }
  0x9e   : > { %1218 = vmatprep.subr.bf16.mxu0 %v1378_v59 }
  0x9f   : > { %1252 = vmatpush3.bf16.msra.mxu1 %v1386_v10 }
  0xa0   : > { %1253 = vmatprep.subr.bf16.mxu1 %v1524_v43 }
  0xa1   : > { %1219 = vmatpush3.bf16.msra.mxu0 %v1379_v1 }
  0xa2   : > { %1220 = vmatprep.subr.bf16.mxu0 %v1380_v2 }
  0xa3   : > { %1254 = vmatpush3.bf16.msra.mxu1 %v1387_v11 }
  0xa4   : > { %1255 = vmatprep.subr.bf16.mxu1 %v1524_v43 }
  0xa5   : > { %1221 = vmatpush3.bf16.msra.mxu0 %v1381_v3 }
  0xa7   : > { %1256 = vmatpush3.bf16.msra.mxu1 %v1388_v12 }
  0xa8   : > { %817 = vmatmul.mubr.bf16.vlgmr.msra.gmra.mrb[4].mxu0 %v296_v6  ;;  %1257 = vmatprep.subr.bf16.mxu1 %v1524_v43 }
  0xab   : > { %1258 = vmatpush3.bf16.msra.mxu1 %v1389_v13 }
  0xac   : > { %1259 = vmatprep.subr.bf16.mxu1 %v1524_v43 }
  0xaf   : > { %1260 = vmatpush3.bf16.msra.mxu1 %v1390_v14 }
 0x15b   : > { %v1178_v15 = vpop.f32.mrb[0].mxu0 }
 0x15c   : > { %v1179_v17 = vpop.f32.mrb[1].mxu0 }
 0x15d   : > { %v1180_v18 = vadd.f32 %v1179_v17, %v1178_v15  ;;  %v1181_v19 = vpop.f32.mrb[2].mxu0  ;;  %v1200_v20 = vpop.f32.mrb[0].mxu1 }
 0x15e   : > { %v1182_v21 = vpop.f32.mrb[3].mxu0  ;;  %v1201_v24 = vpop.f32.mrb[1].mxu1 }
 0x15f   : > { %v737_v22 = vadd.f32 %v1180_v18, %v1091_v16  ;;  %v1183_v23 = vadd.f32 %v1182_v21, %v1181_v19  ;;  %v1202_v25 = vadd.f32 %v1201_v24, %v1200_v20  ;;  %v1203_v26 = vpop.f32.mrb[2].mxu1 }
 0x160   : > { %v1204_v28 = vpop.f32.mrb[3].mxu1 }
 0x161   : > { %v740_v27 = vadd.f32 %v1183_v23, %v1091_v16  ;;  %v778_v29 = vadd.f32 %v1202_v25, %v737_v22  ;;  %v1205_v30 = vadd.f32 %v1204_v28, %v1203_v26 }
 0x163   : > { %v781_v31 = vadd.f32 %v1205_v30, %v740_v27 }
 0x165   : > { %v859_v32 = vpop.f32.mrb[4].mxu1 }
 0x166   : > { %v1243_v33 = vpop.f32.mrb[5].mxu1 }
 0x167   : > { %v862_v34 = vpop.f32.mrb[6].mxu1 }
 0x168   : > { %v1244_v35 = vpop.f32.mrb[7].mxu1 }
 0x17b   : > { %v1222_v36 = vpop.f32.mrb[4].mxu0 }
 0x17c   : > { %v1223_v37 = vpop.f32.mrb[5].mxu0 }
 0x17d   : > { %v1224_v38 = vadd.f32 %v1223_v37, %v1222_v36  ;;  %v1225_v39 = vpop.f32.mrb[6].mxu0 }
 0x17e   : > { %v1226_v40 = vpop.f32.mrb[7].mxu0 }
 0x17f   : > { %v819_v41 = vadd.f32 %v1224_v38, %v778_v29  ;;  %v1227_v42 = vadd.f32 %v1226_v40, %v1225_v39 }
 0x181   : > { %v860_v43 = vadd.f32 %v859_v32, %v819_v41  ;;  %v822_v44 = vadd.f32 %v1227_v42, %v781_v31 }
 0x183   : > { %v863_v45 = vadd.f32 %v862_v34, %v822_v44  ;;  %v866_v46 = vmax.f32 %v860_v43, 0.0 }
 0x185   : > { %v867_v47 = vmax.f32 %v863_v45, 0.0 }
 0x187   : > { %v868_v48 = vpack.c.bf16 %v867_v47, %v866_v46 }
 0x189   : > { %1262 = vmatmul.mubr.bf16.vlgmr.msra.gmra.mrb[8].mxu1 %v868_v48 }
 0x25c   : > { %v974_v50 = vpop.f32.mrb[8].mxu1 }
 0x25d   : > { %v1263_v51 = vpop.f32.mrb[9].mxu1  ;;  %v975_v53 = vadd.f32 %v1142_v49, %v974_v50 }
 0x25e   : > { %v977_v52 = vpop.f32.mrb[10].mxu1 }
 0x25f   : > { %v978_v54 = vadd.f32 %v1142_v49, %v977_v52  ;;  %v1264_v55 = vpop.f32.mrb[11].mxu1 }
 0x261   : > { %v1160_v56 = vpack.c.bf16 %v978_v54, %v975_v53 }
 0x263   : > { %1161 = vst [vmem:[%s275_s28] sm:$0xff] %v1160_v56  }
 0x264 PF: > { %p16_p6 = scmp.ge.s32.totalorder %s1652_s12, 4   ;;  %s1787_s18 = smov %s1507_s19 }
 0x265   : > { %s1788_s19 = smov %s1511_s20  ;;  %s1789_s20 = smov %s1663_s17 }
 0x266   : > { %s1790_s21 = smov %s1652_s12  ;;  %18 = sbr.rel (!%p16_p6) target bundleno = 4 (0x4), region = 88 }
 0x26d   :  { %1013 = vsyncpa [#allocation3], 1 }
 0x26e   :  { %1015 = vsyncpa [#allocation3 + $0x1], 1 }
 0x26f   :  { %1016 = vsyncpa [#allocation5], 1 }

</bundles_post_ra>
